<compile_context>
chip_gen: v7x
topology: tpu7x:2x2x1
jax: 0.10.0
libtpu: 0.0.40
codegen_flags: <defaults>
</compile_context>

<pallas_src>
import functools
import math

import jax
import jax.numpy as jnp
from jax.experimental import pallas as pl
from jax.experimental.pallas import tpu as pltpu

_DEFAULT_WORKSET = 24 * 1024 * 1024   # double-buffered working-set target
_DEFAULT_LIMIT = 48 * 1024 * 1024     # scoped VMEM limit, fits v5e/v6e/v7x
_LANE_CAP = 4096                      # prefer wide lanes, short rows


def _round_up(n, m):
    return ((n + m - 1) // m) * m


def _sublane(itemsize):
    # sublane packing: f32 -> 8 rows/vreg, bf16 -> 16, int8/fp8 -> 32
    return {4: 8, 2: 16, 1: 32}.get(itemsize, 8)


def _vmem_budgets():
    """Chip-aware (working-set, scoped-limit) bytes.

    Defaults are already safe on v7x's 64 MiB/TC VMEM; the hardware query can
    only lower them further (e.g. mock/emulated targets), never raise them.
    """
    workset, limit = _DEFAULT_WORKSET, _DEFAULT_LIMIT
    try:
        cap = getattr(pltpu.get_tpu_info(), "vmem_capacity_bytes", None)
        if cap:
            workset = min(workset, cap // 3)
            limit = min(limit, cap // 2)
    except Exception:
        pass
    return workset, limit


def _glu_kernel(x1_ref, x2_ref, o_ref, *, activation_fn):
    # Compute in f32 (matches PyTorch's fp32-internal sigmoid/silu for bf16
    # inputs, keeps exp/recip on the EUP on v5e); single cast at the store.
    x1 = x1_ref[...].astype(jnp.float32)
    x2 = x2_ref[...].astype(jnp.float32)
    o_ref[...] = (x1 * activation_fn(x2)).astype(o_ref.dtype)


def _pick_tiles(rows, hidden, itemsize, sub, workset, lane_aligned):
    """Pick (tile_rows, tile_hidden).

    Bias: widest possible lane block (long contiguous DMA runs, unmasked wide
    stores), rows shrink under the double-buffered working-set budget
    (2 buffers x (2 input blocks + 1 output block)).  Then make sure the grid
    has >=2 (ideally >=4) blocks so v7x's two TensorCores both get work.
    """
    if not lane_aligned or hidden <= _LANE_CAP:
        th = hidden
    else:
        th = (_LANE_CAP // 128) * 128
        while hidden % th:
            th -= 128
        # Degenerate divisor (e.g. hidden = 128 * prime): use the full lane
        # width instead of 128-lane slivers, as long as a minimal (sub-row)
        # block still fits the budget.
        if th < 512 and 6 * sub * hidden * itemsize <= workset:
            th = hidden

    max_rows = max(sub, workset // (6 * th * itemsize))
    tr = max(sub, min(1024, (max_rows // sub) * sub))
    tr = min(tr, _round_up(rows, sub))
    tr = max(sub, (tr // sub) * sub)

    def nblocks(tr_, th_):
        return pl.cdiv(rows, tr_) * (hidden // th_)

    # Split the row axis first (always sublane-aligned) ...
    while nblocks(tr, th) < 4 and tr > sub:
        tr = max(sub, ((tr // 2) // sub) * sub)
    # ... then the lane axis if rows alone can't produce enough blocks.
    while lane_aligned and nblocks(tr, th) < 4 and th % 256 == 0:
        th //= 2

    return tr, th


def glu_forward(x, activation_fn=jax.nn.sigmoid):
    """x: (..., 2*hidden).  Returns x1 * activation_fn(x2), shape (..., hidden)."""
    *lead, two_h = x.shape
    assert two_h % 2 == 0, "last dim must be even for chunk(2, dim=-1)"
    hidden = two_h // 2
    rows = math.prod(lead) if lead else 1
    x2d = x.reshape(rows, two_h)

    itemsize = jnp.dtype(x.dtype).itemsize
    sub = _sublane(itemsize)
    workset, vmem_limit = _vmem_budgets()
    lane_aligned = (hidden % 128 == 0)
    tile_rows, tile_hidden = _pick_tiles(rows, hidden, itemsize, sub,
                                         workset, lane_aligned)
    kernel = functools.partial(_glu_kernel, activation_fn=activation_fn)

    if lane_aligned:
        # ---- fast path: tile rows (sublanes) AND hidden (lanes) -------------
        h_blocks = hidden // tile_hidden
        grid = (pl.cdiv(rows, tile_rows), h_blocks)
        out2d = pl.pallas_call(
            kernel,
            out_shape=jax.ShapeDtypeStruct((rows, hidden), x.dtype),
            grid=grid,
            in_specs=[
                # x1: lane-block j of the first half of the last dim
                pl.BlockSpec((tile_rows, tile_hidden), lambda i, j: (i, j)),
                # x2: same rows, lane-block offset by h_blocks (second half)
                pl.BlockSpec((tile_rows, tile_hidden),
                             lambda i, j: (i, j + h_blocks)),
            ],
            out_specs=pl.BlockSpec((tile_rows, tile_hidden),
                                   lambda i, j: (i, j)),
            compiler_params=pltpu.CompilerParams(
                dimension_semantics=("parallel", "parallel"),
                vmem_limit_bytes=vmem_limit,
            ),
        )(x2d, x2d)   # same buffer, two read-only views (x1 half / x2 half)
    else:
        # ---- fallback: hidden not lane-aligned -------------------------------
        # Split wrapper-side so the kernel never does a lane-unaligned slice
        # (which would force an XLU relayout / VMEM copy of the half block).
        x1 = x2d[:, :hidden]
        x2 = x2d[:, hidden:]
        grid = (pl.cdiv(rows, tile_rows),)
        out2d = pl.pallas_call(
            kernel,
            out_shape=jax.ShapeDtypeStruct((rows, hidden), x.dtype),
            grid=grid,
            in_specs=[pl.BlockSpec((tile_rows, hidden), lambda i: (i, 0)),
                      pl.BlockSpec((tile_rows, hidden), lambda i: (i, 0))],
            out_specs=pl.BlockSpec((tile_rows, hidden), lambda i: (i, 0)),
            compiler_params=pltpu.CompilerParams(
                dimension_semantics=("parallel",),
                vmem_limit_bytes=vmem_limit,
            ),
        )(x1, x2)

    return out2d.reshape(*lead, hidden)


if __name__ == "__main__":
    # _GLUBaseModule has no parameters; activation_fn is supplied at
    # construction (e.g. sigmoid -> GLU).  Use sigmoid here.
    key = jax.random.PRNGKey(0)

    # 1) primary check: small, lane-aligned f32 shape
    batch, seq, hidden = 2, 8, 256            # x last dim = 2*hidden = 512
    x = jax.random.normal(key, (batch, seq, 2 * hidden), dtype=jnp.float32)
    out = jax.block_until_ready(glu_forward(x, activation_fn=jax.nn.sigmoid))
    x1, x2 = jnp.split(x, 2, axis=-1)
    ref = x1 * jax.nn.sigmoid(x2)
    assert out.shape == ref.shape == (batch, seq, hidden)
    assert jnp.allclose(out, ref, atol=1e-6, rtol=1e-6)

    # 2) ragged rows: row count not a multiple of the sublane tile
    #    (exercises pl.cdiv grid + masked last row block, no jnp.pad anywhere)
    xr = jax.random.normal(jax.random.PRNGKey(0), (3, 5, 2 * 384),
                           dtype=jnp.float32)
    outr = jax.block_until_ready(glu_forward(xr, activation_fn=jax.nn.sigmoid))
    x1r, x2r = jnp.split(xr, 2, axis=-1)
    refr = x1r * jax.nn.sigmoid(x2r)
    assert outr.shape == refr.shape == (3, 5, 384)
    assert jnp.allclose(outr, refr, atol=1e-6, rtol=1e-6)

    # 3) fallback path: hidden not a multiple of 128 (wrapper-side split)
    xf = jax.random.normal(jax.random.PRNGKey(0), (4, 6, 2 * 100),
                           dtype=jnp.float32)
    outf = jax.block_until_ready(glu_forward(xf, activation_fn=jax.nn.sigmoid))
    x1f, x2f = jnp.split(xf, 2, axis=-1)
    reff = x1f * jax.nn.sigmoid(x2f)
    assert outf.shape == reff.shape == (4, 6, 100)
    assert jnp.allclose(outf, reff, atol=1e-6, rtol=1e-6)

    # 4) bf16 input: activation computed in f32 in-kernel, cast at the store
    xb = jax.random.normal(jax.random.PRNGKey(0), (2, 8, 512),
                           dtype=jnp.bfloat16)
    outb = jax.block_until_ready(glu_forward(xb, activation_fn=jax.nn.sigmoid))
    x1b, x2b = jnp.split(xb.astype(jnp.float32), 2, axis=-1)
    refb = x1b * jax.nn.sigmoid(x2b)
    assert outb.shape == (2, 8, 256)
    assert jnp.allclose(outb.astype(jnp.float32), refb, atol=2e-2, rtol=2e-2)

    print("KERNEL_OK")
</pallas_src>

<mosaic_0001>
module attributes {stable_mosaic.version = 11 : i64} {
  func.func @_glu_kernel(%arg0: i32, %arg1: i32, %arg2: memref<8x128xf32, #tpu.memory_space<vmem>>, %arg3: memref<8x128xf32, #tpu.memory_space<vmem>>, %arg4: memref<8x128xf32, #tpu.memory_space<vmem>>) attributes {dimension_semantics = [#tpu.dimension_semantics<parallel>, #tpu.dimension_semantics<parallel>], iteration_bounds = array<i64: 2, 2>, scalar_prefetch = 0 : i64, scratch_operands = 0 : i64, tpu.core_type = #tpu.core_type<tc>, window_params = [{transform_indices = @transform_0, window_bounds = array<i64: 8, 128>}, {transform_indices = @transform_1, window_bounds = array<i64: 8, 128>}, {transform_indices = @transform_2, window_bounds = array<i64: 8, 128>}]} {
    %c0 = arith.constant 0 : index
    %c0_0 = arith.constant 0 : index
    %0 = vector.load %arg2[%c0, %c0_0] : memref<8x128xf32, #tpu.memory_space<vmem>>, vector<8x128xf32>
    %c0_1 = arith.constant 0 : index
    %c0_2 = arith.constant 0 : index
    %1 = vector.load %arg3[%c0_1, %c0_2] : memref<8x128xf32, #tpu.memory_space<vmem>>, vector<8x128xf32>
    %2 = arith.negf %1 : vector<8x128xf32>
    %3 = math.exp %2 : vector<8x128xf32>
    %cst = arith.constant 1.000000e+00 : f32
    %4 = vector.broadcast %cst : f32 to vector<8x128xf32>
    %5 = arith.addf %4, %3 : vector<8x128xf32>
    %6 = arith.divf %4, %5 : vector<8x128xf32>
    %7 = arith.mulf %0, %6 : vector<8x128xf32>
    %c0_3 = arith.constant 0 : index
    %c0_4 = arith.constant 0 : index
    %8 = vector.load %arg4[%c0_3, %c0_4] : memref<8x128xf32, #tpu.memory_space<vmem>>, vector<8x128xf32>
    tpu.vector_store %arg4[%c0_3, %c0_4], %7 {strides = array<i32>} : memref<8x128xf32, #tpu.memory_space<vmem>>, vector<8x128xf32>,
    return
  }
  func.func @transform_0(%arg0: i32, %arg1: i32) -> (i32, i32) {
    %c0_i32 = arith.constant 0 : i32
    return %arg0, %arg1 : i32, i32
  }
  func.func @transform_1(%arg0: i32, %arg1: i32) -> (i32, i32) {
    %c2_i32 = arith.constant 2 : i32
    %0 = arith.addi %arg1, %c2_i32 : i32
    %c0_i32 = arith.constant 0 : i32
    return %arg0, %0 : i32, i32
  }
  func.func @transform_2(%arg0: i32, %arg1: i32) -> (i32, i32) {
    %c0_i32 = arith.constant 0 : i32
    return %arg0, %arg1 : i32, i32
  }
}

</mosaic_0001>

<bundles_post_ra>
// kernel: tpu_custom_call.1
= control target key start
LH: loop header
LB: loop body
LE: loop exit
PB: predicated region body
PF: predicated region fallthrough
CT: control target
= control target key end

     0   :  { %7 = vsyncpa [#allocation3], 0  ;;  %s1017_s0 = inlined_call_operand.hbm [shape: f32[16,512], index: 0, kind: input, shape index: {}]   ;;  %s1018_s1 = inlined_call_operand.hbm [shape: f32[16,512], index: 1, kind: input, shape index: {}]   ;;  %s1019_s2 = inlined_call_operand.hbm [shape: f32[16,256], index: 2, kind: output, shape index: {}]  }
   0x1   :  { %9 = vsyncpa [#allocation3 + $0x1], 0 }
   0x2   :  { %10 = vsyncpa [#allocation6], 0 }
   0x3   :  { %12 = vsyncpa [#allocation6 + $0x1], 0 }
   0x4   :  { %13 = vsyncpa [#allocation4], 0 }
   0x5   :  { %15 = vsyncpa [#allocation4 + $0x1], 0  ;;  %s697_s9 = smov 0   ;;  %s699_s10 = smov 0  }
   0x6   :  { %s701_s11 = smov 0   ;;  %s703_s12 = smov 0  }
   0x7   :  { %s705_s13 = smov 0   ;;  %s707_s14 = smov 0  }
   0x8   :  { %s709_s15 = smov 0   ;;  %s711_s16 = smov 0  }
   0x9   :  { %s713_s17 = smov 0   ;;  %s715_s18 = smov 0  }
   0xa   :  { %s717_s19 = smov 0  }
   0xb LB: > { %1030 = sst [smem:[#allocation11_spill]] %s673_s18  ;;  %s359_s20 = sadd.s32 4294967295, %s677_s19   ;;  %s677_s19 = sphi %s717_s19, %s21_s19   ;;  %s673_s18 = sphi %s715_s18, %s1055_s18   ;;  %s669_s17 = sphi %s713_s17, %s1063_s17   ;;  %s665_s16 = sphi %s711_s16, %s1053_s16   ;;  %s661_s15 = sphi %s709_s15, %s1062_s15   ;;  %s657_s14 = sphi %s707_s14, %s1061_s14   ;;  %s653_s13 = sphi %s705_s13, %s1060_s13   ;;  %s649_s12 = sphi %s703_s12, %s1059_s12   ;;  %s645_s11 = sphi %s701_s11, %s1058_s11   ;;  %s641_s10 = sphi %s699_s10, %s1057_s10   ;;  %s637_s9 = sphi %s697_s9, %s1056_s9  }
   0xc   : > { %s360_s21 = sadd.s32 4294967294, %s677_s19   ;;  %s30_s22 = sadd.s32 1, %s669_s17 }
   0xd   : > { %s33_s23 = sadd.s32 1, %s673_s18  ;;  %p31_p0 = scmp.ge.s32.totalorder %s30_s22, 2 }
   0xe   : > { %s42_s24 = sadd.s32 1, %s657_s14  ;;  %p49_p1 = scmp.ne.s32.totalorder %s657_s14, %s653_s13 }
   0xf   : > { %p1022_p2 = scmp.eq.s32.totalorder %s677_s19, 0  ;;  %s1065_s22 = smov (%p31_p0, %s30_s22), 0 }
  0x10   : > { %1031 = sst [smem:[#allocation12_spill]] %s1065_s22  ;;  %s1067_s23 = smov (!%p31_p0, %s33_s23), %s673_s18 }
  0x11   : > { %s38_s25 = ssub.s32 %s669_s17, %s1065_s22  ;;  %p770_p3 = por %p1022_p2, %p49_p1 }
  0x12   : > { %p35_p4 = scmp.ge.s32.totalorder %s1067_s23, 2  ;;  %p55_p5 = scmp.ne.s32.totalorder %s653_s13, %s649_s12 }
  0x13   : > { %p776_p6 = scmp.eq.s32.totalorder %s359_s20, 0  ;;  %s65_s28 = sadd.s32 2, %s669_s17 }
  0x14   : > { %s1069_s23 = smov (%p35_p4, %s1067_s23), 0  ;;  %s66_s30 = sadd.s32 2, %s1065_s22 }
  0x15   : > { %s1033_s27 = scalar_select %p776_p6, 1, 0 }
  0x16   : > { %1034 = sst [smem:[#allocation13_spill]] %s1069_s23  ;;  %p788_p7 = por %p776_p6, %p55_p5 }
  0x17   : > { %s37_s3 = ssub.s32 %s673_s18, %s1069_s23  ;;  %s68_s4 = ssub.s32 %s65_s28, %s66_s30 }
  0x18   : > { %s1035_s29 = scalar_select %p788_p7, 1, 0 }
  0x19   : > { %s39_s5 = sor.u32 %s38_s25, %s37_s3  ;;  %s69_s6 = sor.u32 %s68_s4, %s37_s3 }
  0x1a   : > { %p40_p8 = scmp.eq.s32.totalorder %s39_s5, 0  ;;  %p795_p9 = scmp.eq.s32.totalorder %s69_s6, 0 }
  0x1b   : > { %p111_p10 = scmp.eq.s32.totalorder %s359_s20, 3  ;;  %p117_p11 = scmp.eq.s32.totalorder %s360_s21, 3 }
  0x1c   : > { %s800_s8 = scalar_select %p40_p8, %s657_s14, %s42_s24  }
  0x1d   : > { %p805_p12 = por %p111_p10, %p49_p1  ;;  %p812_p13 = por %p117_p11, %p55_p5 }
  0x1e   : > { %p1025_p0 = scmp.lt.s32.totalorder %s677_s19, 4  ;;  %s137_s28 = sand.u32 1, %s657_s14  }
  0x1f   : > { %s1037_s22 = scalar_select %p805_p12, 1, 0 }
  0x20   : > { %s1038_s25 = scalar_select %p812_p13, 1, 0 }
  0x21   : > { %s364_s30 = sshll.u32 %s673_s18, 2  ;;  %s363_s3 = sshll.u32 %s137_s28, 3 }
  0x22   : > { %s820_s20 = sadd.s32 %s669_s17, %s364_s30  ;;  %s141_s24 = scalar_lea.vmem [#allocation2], %s363_s3 }
  0x23   : > { %s1023_s21 = sshll.u32 %s820_s20, 7  ;;  %s150_s4 = sshll.u32 %s141_s24, 4  ;;  %s830_s4 = int_to_ptr.vmem [resolvable:$true] %s150_s4 }
  0x24   : > { %s828_s23 = scalar_lea.hbm %s1017_s0, %s1023_s21  ;;  %p836_p1 = pnand %p1025_p0, %p770_p3 }
  0x25   : > { %s138_s3 = scalar_lea.sflag [#allocation3], %s137_s28  ;;  %s490_s24 = scalar_lea.hbm %s828_s23, 128 }
  0x26   : > { %p491_p8 = scmp.ne.s32.totalorder %s828_s23, %s490_s24  ;;  %p492_p10 = pneg %p836_p1 }
  0x27   : > { %s495_s6 = scalar_lea.hbm %s1017_s0, 1024  ;;  %p496_p3 = scmp.lt.u32.totalorder %s828_s23, %s1017_s0 }
  0x28   : > { %p493_p11 = pnand %p492_p10, %p491_p8  ;;  %p497_p0 = scmp.lt.u32.totalorder %s495_s6, %s490_s24 }
  0x29   : > { %p499_p5 = scmp.lt.u32.totalorder %s490_s24, %s828_s23 }
  0x2a   : > { %p494_p2 = pneg %p493_p11  ;;  %p498_p4 = por %p497_p0, %p496_p3 }
  0x2c   : > { %p500_p13 = por %p499_p5, %p498_p4 }
  0x2e   : > { %p501_p12 = pnand %p500_p13, %p494_p2 }
  0x30   : > { %504 = shalt.err (!%p501_p12)
}
  0x31   : > { %s505_s28 = scalar_lea.vmem %s830_s4, 128  ;;  %s679_s5 = smov [#allocation2]  }
  0x32   : > { %p506_p8 = scmp.ne.s32.totalorder %s830_s4, %s505_s28  ;;  %s510_s26 = sshll.u32 %s679_s5, 4  ;;  %s511_s26 = int_to_ptr.vmem [resolvable:$false] %s510_s26 }
  0x33   : > { %s512_s18 = scalar_lea.vmem %s511_s26, 256  ;;  %p513_p6 = scmp.lt.s32.totalorder %s830_s4, %s511_s26 }
  0x34   : > { %p508_p11 = pnand %p506_p8, %p492_p10  ;;  %p514_p0 = scmp.lt.s32.totalorder %s512_s18, %s505_s28 }
  0x36   : > { %p509_p7 = pneg %p508_p11  ;;  %p515_p3 = por %p514_p0, %p513_p6 }
  0x38   : > { %p516_p4 = pnand %p515_p3, %p509_p7 }
  0x3a   : > { %519 = shalt.err (!%p516_p4)
}
  0x3b   : > { %388 = dma.hbm_to_vmem [thread:$0]  (!%p836_p1), %s828_s23, 128, %s830_s4, %s138_s3  }
  0x3c   : > { %p1040_p2 = scmp.lt.s32.totalorder %s677_s19, 5  ;;  %p1041_p6 = scmp.ge.s32.totalorder %s677_s19, 1 }
  0x3d   : > { %s72_s30 = sadd.s32 1, %s645_s11  ;;  %p79_p12 = scmp.ne.s32.totalorder %s645_s11, %s641_s10 }
  0x3e   : > { %p871_p7 = pnand %p1041_p6, %p1040_p2  ;;  %p85_p13 = scmp.ne.s32.totalorder %s641_s10, %s637_s9 }
  0x3f   : > { %s879_s24 = scalar_select %p795_p9, %s645_s11, %s72_s30  }
  0x40   : > { %s157_s6 = sand.u32 1, %s645_s11   ;;  %s1043_s28 = sshll.u32 %s820_s20, 7 }
  0x41   : > { %s288_s18 = scalar_lea.hbm %s1018_s1, %s1043_s28  ;;  %p1044_p5 = scmp.eq.s32.totalorder %s677_s19, 0 }
  0x42   : > { %p1045_p10 = scmp.ne.s32.totalorder %s1033_s27, 0  ;;  %s366_s4 = sshll.u32 %s157_s6, 3 }
  0x43   : > { %p81_p1 = por %p79_p12, %p1044_p5  ;;  %s899_s3 = scalar_lea.hbm %s288_s18, 256 }
  0x44   : > { %p895_p8 = por %p85_p13, %p1045_p10  ;;  %s161_s9 = scalar_lea.vmem [#allocation5], %s366_s4 }
  0x45   : > { %s171_s7 = sshll.u32 %s161_s9, 4  ;;  %p1047_p9 = scmp.lt.s32.totalorder %s677_s19, 4  ;;  %s907_s7 = int_to_ptr.vmem [resolvable:$true] %s171_s7 }
  0x46   : > { %s1046_s23 = scalar_select %p895_p8, 1, 0 }
  0x47   : > { %p903_p11 = pnand %p1047_p9, %p81_p1  ;;  %s158_s27 = scalar_lea.sflag [#allocation6], %s157_s6 }
  0x48   : > { %s550_s30 = scalar_lea.hbm %s288_s18, 384  ;;  %s525_s26 = scalar_lea.hbm %s1018_s1, 1024 }
  0x49   : > { %p521_p0 = scmp.ne.s32.totalorder %s899_s3, %s550_s30  ;;  %p522_p3 = pneg %p903_p11 }
  0x4a   : > { %p526_p6 = scmp.lt.u32.totalorder %s899_s3, %s1018_s1  ;;  %p527_p12 = scmp.lt.u32.totalorder %s525_s26, %s550_s30 }
  0x4b   : > { %p523_p4 = pnand %p522_p3, %p521_p0  ;;  %p529_p5 = scmp.lt.u32.totalorder %s550_s30, %s899_s3 }
  0x4c   : > { %p528_p13 = por %p527_p12, %p526_p6 }
  0x4d   : > { %p524_p2 = pneg %p523_p4 }
  0x4e   : > { %p530_p1 = por %p529_p5, %p528_p13 }
  0x50   : > { %p531_p10 = pnand %p530_p1, %p524_p2 }
  0x52   : > { %534 = shalt.err (!%p531_p10)
}
  0x53   : > { %s535_s6 = scalar_lea.vmem %s907_s7, 128  ;;  %s680_s18 = smov [#allocation5]  }
  0x54   : > { %p536_p9 = scmp.ne.s32.totalorder %s907_s7, %s535_s6  ;;  %s540_s28 = sshll.u32 %s680_s18, 4  ;;  %s541_s28 = int_to_ptr.vmem [resolvable:$false] %s540_s28 }
  0x55   : > { %s542_s5 = scalar_lea.vmem %s541_s28, 256  ;;  %p543_p8 = scmp.lt.s32.totalorder %s907_s7, %s541_s28 }
  0x56   : > { %p538_p0 = pnand %p536_p9, %p522_p3  ;;  %p544_p6 = scmp.lt.s32.totalorder %s542_s5, %s535_s6 }
  0x58   : > { %p539_p4 = pneg %p538_p0  ;;  %p545_p12 = por %p544_p6, %p543_p8 }
  0x5a   : > { %p546_p13 = pnand %p545_p12, %p539_p4 }
  0x5c   : > { %549 = shalt.err (!%p546_p13)
}
  0x5d   : > { %391 = dma.hbm_to_vmem [thread:$0]  (!%p903_p11), %s899_s3, 128, %s907_s7, %s158_s27  }
  0x5e   : > { %180 = sbr.rel (%p871_p7) target bundleno = 149 (0x95), region = 28  ;;  %s936_s30 = sand.u32 (!%p871_p7), 1, %s653_s13  }
  0x5f   : > { %s370_s26 = sshll.u32 (!%p871_p7), %s936_s30, 3  ;;  %s183_s4 = scalar_lea.sflag (!%p871_p7), [#allocation3], %s936_s30 }
  0x60   : > { %s186_s9 = scalar_lea.vmem (!%p871_p7), [#allocation2], %s370_s26  ;;  %p1049_p8 = scmp.ne.s32.totalorder (!%p871_p7), %s1035_s29, 0 }
  0x65   : > { %624 = dma.done.wait (%p1049_p8), %s183_s4, 128  }
  0x66   : > { %626 = vsyncadd (%p1049_p8), %s183_s4, 4294967168  ;;  %s191_s3 = sand.u32 1, %s641_s10   ;;  %p1050_p7 = scmp.ne.s32.totalorder %s1046_s23, 0 }
  0x67   : > { %s371_s7 = sshll.u32 %s191_s3, 3  ;;  %s192_s21 = scalar_lea.sflag [#allocation6], %s191_s3 }
  0x68   : > { %s195_s20 = scalar_lea.vmem [#allocation5], %s371_s7 }
  0x69   : > { %628 = dma.done.wait (%p1050_p7), %s192_s21, 128  }
  0x6a   : > { %630 = vsyncadd (%p1050_p7), %s192_s21, 4294967168  ;;  %v223_v0 = vld [vmem:[%s195_s20] sm:$0xff]  ;;  %s375_s29 = sshll.u32 %s665_s16, 1  ;;  %v222_v4 = vld [vmem:[%s186_s9] sm:$0xff]  ;;  %s220_s6 = scalar_lea.vmem [#allocation7], %s370_s26 }
  0x6b   : > { %v373_v1 = vmul.f32 -1.442695, %v223_v0  ;;  %s244_s27 = sadd.s32 %s661_s15, %s375_s29  ;;  %s248_s18 = sshll.u32 %s220_s6, 4  ;;  %s951_s18 = int_to_ptr.vmem [resolvable:$true] %s248_s18 }
  0x6c   : > { %s376_s28 = sshll.u32 %s244_s27, 7  ;;  %s233_s3 = scalar_lea.sflag [#allocation4], %s936_s30 }
  0x6d   : > { %486 = vpow2.f32 %v373_v1  ;;  %s956_s4 = scalar_lea.hbm %s1019_s2, %s376_s28  ;;  %s551_s16 = scalar_lea.vmem %s951_s18, 128 }
  0x6e   : > { %p552_p11 = scmp.ne.s32.totalorder %s951_s18, %s551_s16  ;;  %p1051_p3 = scmp.ne.s32.totalorder %s1037_s22, 0 }
  0x6f   : > { %s681_s15 = smov [#allocation7]  }
  0x70   : > { %p553_p2 = pnand %p552_p11, %p1051_p3  ;;  %s555_s26 = sshll.u32 %s681_s15, 4  ;;  %s556_s26 = int_to_ptr.vmem [resolvable:$false] %s555_s26 }
  0x71   : > { %s557_s9 = scalar_lea.vmem %s556_s26, 256  ;;  %p558_p1 = scmp.lt.s32.totalorder %s951_s18, %s556_s26 }
  0x72   : > { %p554_p5 = pneg %p553_p2  ;;  %p559_p10 = scmp.lt.s32.totalorder %s557_s9, %s551_s16 }
  0x74   : > { %p560_p9 = por %p559_p10, %p558_p1 }
  0x76   : > { %p561_p0 = pnand %p560_p9, %p554_p5 }
  0x77   : > { %v487_v2 = vpop.eup %486 }
  0x78   : > { %v227_v3 = vadd.f32 1.0, %v487_v2 }
  0x7a   : > { %488 = vrcp.f32 %v227_v3 }
  0x84   : > { %v489_v5 = vpop.eup %488 }
  0x85   : > { %v230_v6 = vmul.f32 %v489_v5, %v222_v4 }
  0x87   : > { %231 = vst [vmem:[%s220_s6] sm:$0xff] %v230_v6 }
  0x88   : > { %564 = shalt.err (!%p561_p0)
}
  0x89   : > { %s565_s30 = scalar_lea.hbm %s956_s4, 128  ;;  %s569_s20 = scalar_lea.hbm %s1019_s2, 512 }
  0x8a   : > { %p566_p4 = scmp.ne.s32.totalorder %s956_s4, %s565_s30  ;;  %p570_p13 = scmp.lt.u32.totalorder %s956_s4, %s1019_s2 }
  0x8b   : > { %p571_p8 = scmp.lt.u32.totalorder %s569_s20, %s565_s30  ;;  %p573_p11 = scmp.lt.u32.totalorder %s565_s30, %s956_s4 }
  0x8c   : > { %p567_p6 = pnand %p566_p4, %p1051_p3 }
  0x8d   : > { %p572_p7 = por %p571_p8, %p570_p13 }
  0x8e   : > { %p568_p12 = pneg %p567_p6 }
  0x8f   : > { %p574_p2 = por %p573_p11, %p572_p7 }
  0x91   : > { %p575_p5 = pnand %p574_p2, %p568_p12 }
  0x93   : > { %578 = shalt.err (!%p575_p5)
}
  0x94   : > { %383 = dma.vmem_to_hbm [thread:$0]  (%p1051_p3), %s951_s18, 128, %s956_s4, %s233_s3  }
  0x95 PF: > { %p397_p1 = scmp.ge.s32.totalorder %s677_s19, 2  ;;  %s260_s6 = sand.u32 1, %s649_s12  }
  0x96   : > { %p1052_p10 = scmp.ne.s32.totalorder %s1038_s25, 0  ;;  %s261_s28 = scalar_lea.sflag [#allocation4], %s260_s6 }
  0x98   : > { %p393_p9 = pnand %p397_p1, %p1052_p10 }
  0x9a   : > { %632 = dma.done.wait (!%p393_p9), %s261_s28, 128  }
  0x9b   : > { %634 = vsyncadd (!%p393_p9), %s261_s28, 4294967168  ;;  %s21_s19 = sadd.s32 1, %s677_s19   ;;  %s1053_s16 = sld [smem:[#allocation11_spill]] }
  0x9c   : > { %p18_p0 = scmp.ge.s32.totalorder %s21_s19, 6   ;;  %s1054_s22 = sld [smem:[#allocation12_spill]] }
  0x9d   : > { %s1055_s18 = sld [smem:[#allocation13_spill]]  ;;  %s1056_s9 = smov %s641_s10 }
  0x9e   : > { %s1057_s10 = smov %s645_s11  ;;  %s1058_s11 = smov %s879_s24 }
  0x9f   : > { %s1059_s12 = smov %s653_s13  ;;  %s1060_s13 = smov %s657_s14 }
  0xa0   : > { %s1061_s14 = smov %s800_s8  ;;  %s1062_s15 = smov %s669_s17 }
  0xa1   :  { %20 = sbr.rel (!%p18_p0) target bundleno = 11 (0xb), region = 86 }
  0xa2   : > { %s1063_s17 = smov %s1054_s22 }
  0xa8   :  { %266 = vsyncpa [#allocation3], 1 }
  0xa9   :  { %268 = vsyncpa [#allocation3 + $0x1], 1 }
  0xaa   :  { %269 = vsyncpa [#allocation6], 1 }
  0xab   :  { %271 = vsyncpa [#allocation6 + $0x1], 1 }
  0xac   :  { %272 = vsyncpa [#allocation4], 1 }
  0xad   :  { %274 = vsyncpa [#allocation4 + $0x1], 1 }

</bundles_post_ra>
